<compile_context>
chip_gen: v5e
topology: v5e:2x2
jax: 0.10.0
libtpu: 0.0.40
codegen_flags: <defaults>
</compile_context>

<pallas_src>
import functools
import math

import jax
import jax.numpy as jnp
from jax import lax
from jax.experimental import pallas as pl
from jax.experimental.pallas import tpu as pltpu

_LANES = 128
_SUBLANES = 8
_DFF_CHUNK_MAX = 512          # in-kernel d_ff chunk width (multiple of 128)


def _round_up(x: int, m: int) -> int:
    return (x + m - 1) // m * m


def _cdiv(a: int, b: int) -> int:
    return (a + b - 1) // b


# ---------------------------------------------------------------------------
# One-time hardware probes (safe fallbacks; never fail the script).
# ---------------------------------------------------------------------------
def _physical_vmem_bytes() -> int:
    try:
        return int(pltpu.get_tpu_info().vmem_capacity_bytes)
    except Exception:
        return 64 * 1024 * 1024          # conservative: v7x per-TC VMEM


_VMEM_PHYS = _physical_vmem_bytes()
_VMEM_CAP = int(0.875 * _VMEM_PHYS)      # ~56 MiB on v7x, ~112 MiB on v5e/v6e
_TM_MAX = 512 if _VMEM_PHYS <= 64 * 1024 * 1024 else 1024


def _probe_buffered_single() -> bool:
    """Check that pipeline_mode=pl.Buffered(1) is accepted by this JAX/Mosaic."""
    try:
        def _k(x_ref, o_ref):
            o_ref[...] = x_ref[...]

        f = pl.pallas_call(
            _k,
            out_shape=jax.ShapeDtypeStruct((8, 128), jnp.float32),
            grid=(2,),
            in_specs=[pl.BlockSpec((8, 128), lambda i: (0, 0),
                                   pipeline_mode=pl.Buffered(1))],
            out_specs=pl.BlockSpec((8, 128), lambda i: (0, 0)),
        )
        jax.block_until_ready(f(jnp.zeros((8, 128), jnp.float32)))
        return True
    except Exception:
        return False


_RESIDENT_KW = {"pipeline_mode": pl.Buffered(1)} if _probe_buffered_single() else {}


# ---------------------------------------------------------------------------
# Feature-dim planning (padding + in-kernel d_ff chunking).  Idempotent, so the
# jitted forward can re-derive the plan from the already-padded weight shapes.
# ---------------------------------------------------------------------------
def _pad_feature(d: int) -> int:
    # Lane-dense (multiple-of-128) padding only when the dim is big enough that
    # full 128-lane vregs pay for the extra FLOPs/bytes; tiny dims keep their
    # exact size (full-dim blocks are exempt from the (8,128) rule).
    return _round_up(d, _LANES) if d >= _LANES else d


def _feature_plan(d_model: int, d_ff: int):
    d_model_p = _pad_feature(d_model)
    d_ff_p = _pad_feature(d_ff)
    if d_ff_p <= _DFF_CHUNK_MAX:
        dff_chunk, n_chunks = d_ff_p, 1
    else:
        n_chunks = _cdiv(d_ff_p, _DFF_CHUNK_MAX)
        dff_chunk = _round_up(_cdiv(d_ff_p, n_chunks), _LANES)
        d_ff_p = n_chunks * dff_chunk        # chunks divide d_ff_p evenly
    return d_model_p, d_ff_p, dff_chunk, n_chunks


# ---------------------------------------------------------------------------
# Kernel: one token tile, d_ff processed in chunks, f32 scratch accumulator.
# ---------------------------------------------------------------------------
def ffn_kernel(x_ref, w1_ref, b1_ref, w2_ref, b2_ref, o_ref, acc_ref, *,
               dff_chunk, n_chunks):
    x = x_ref[...]                                  # (tm, d_model_p), compute dtype
    acc_ref[...] = jnp.zeros_like(acc_ref)          # (tm, d_model_p) f32

    def one_chunk(off):
        w1c = w1_ref[:, pl.ds(off, dff_chunk)]      # (d_model_p, dff_chunk)
        b1c = b1_ref[:, pl.ds(off, dff_chunk)]      # (1, dff_chunk) f32
        h = jnp.dot(x, w1c, preferred_element_type=jnp.float32)
        h = jnp.maximum(h + b1c, 0.0)               # bias + ReLU, f32 epilogue
        # dropout1: identity (inference)
        w2c = w2_ref[pl.ds(off, dff_chunk), :]      # (dff_chunk, d_model_p)
        acc_ref[...] += jnp.dot(h.astype(w2_ref.dtype), w2c,
                                preferred_element_type=jnp.float32)

    if n_chunks <= 8:
        for c in range(n_chunks):                   # static slices, fully unrolled
            one_chunk(c * dff_chunk)
    else:
        def body(c, carry):
            one_chunk(pl.multiple_of(c * dff_chunk, _LANES))
            return carry
        lax.fori_loop(0, n_chunks, body, 0, unroll=False)

    o_ref[...] = (acc_ref[...] + b2_ref[...]).astype(o_ref.dtype)
    # dropout2: identity (inference)


# ---------------------------------------------------------------------------
# One-time parameter prep (hoisted out of the per-call forward path).
# ---------------------------------------------------------------------------
def prepare_ffn_params(w1, b1, w2, b2, *, compute_dtype=jnp.bfloat16):
    """w1: [d_ff, d_model], b1: [d_ff], w2: [d_model, d_ff], b2: [d_model].
    Returns transposed / padded / cast params for feed_forward_layer()."""
    d_ff, d_model = w1.shape
    d_model_p, d_ff_p, _, _ = _feature_plan(d_model, d_ff)
    cdt = jnp.dtype(compute_dtype)
    w1t_p = jnp.pad(w1.T.astype(cdt),
                    ((0, d_model_p - d_model), (0, d_ff_p - d_ff)))
    w2t_p = jnp.pad(w2.T.astype(cdt),
                    ((0, d_ff_p - d_ff), (0, d_model_p - d_model)))
    # Biases stay f32: added once per tile onto the f32 accumulator.
    b1_p = jnp.pad(b1.astype(jnp.float32), (0, d_ff_p - d_ff)).reshape(1, d_ff_p)
    b2_p = jnp.pad(b2.astype(jnp.float32),
                   (0, d_model_p - d_model)).reshape(1, d_model_p)
    return w1t_p, b1_p, w2t_p, b2_p


# ---------------------------------------------------------------------------
# Forward (hot path): only x is padded/cast per call; weights are pre-prepped.
# ---------------------------------------------------------------------------
@jax.jit
def feed_forward_layer(x, w1t_p, b1_p, w2t_p, b2_p):
    orig_shape = x.shape
    d_model = orig_shape[-1]
    out_dtype = x.dtype
    cdt = w1t_p.dtype
    d_model_p, d_ff_p = w1t_p.shape
    _, _, dff_chunk, n_chunks = _feature_plan(d_model_p, d_ff_p)

    x2d = x.reshape(-1, d_model)
    n = x2d.shape[0]

    # Token tiling: balance tiles (minimal tail padding) and keep >=2 grid steps
    # when possible so v7x's two TensorCores both get work.
    n_steps_target = max(2, _cdiv(n, _TM_MAX))
    tm = max(_SUBLANES, _round_up(_cdiv(n, n_steps_target), _SUBLANES))

    cb = jnp.dtype(cdt).itemsize
    ob = jnp.dtype(out_dtype).itemsize

    def vmem_estimate(tm_):
        return (2 * tm_ * d_model_p * cb          # x tile (double-buffered)
                + 2 * tm_ * d_model_p * ob        # out tile (double-buffered)
                + d_model_p * d_ff_p * cb         # w1t (resident, single buffer)
                + d_ff_p * d_model_p * cb         # w2t (resident, single buffer)
                + (d_ff_p + d_model_p) * 4        # biases (f32, single buffer)
                + tm_ * dff_chunk * 4             # h chunk (f32)
                + tm_ * dff_chunk * cb            # h chunk cast temp
                + tm_ * d_model_p * 4)            # f32 accumulator scratch

    # Shrink the token tile if the plan would blow the per-generation VMEM cap.
    while tm > _SUBLANES and vmem_estimate(tm) > _VMEM_CAP:
        tm = max(_SUBLANES, _round_up(tm // 2, _SUBLANES))

    num_tiles = _cdiv(n, tm)
    n_pad = num_tiles * tm

    x_p = jnp.pad(x2d.astype(cdt), ((0, n_pad - n), (0, d_model_p - d_model)))

    est = vmem_estimate(tm)
    vmem_limit = int(min(_VMEM_CAP,
                         max(16 * 1024 * 1024, est + est // 4 + 2 * 1024 * 1024)))

    kernel = functools.partial(ffn_kernel, dff_chunk=dff_chunk, n_chunks=n_chunks)

    out_p = pl.pallas_call(
        kernel,
        out_shape=jax.ShapeDtypeStruct((n_pad, d_model_p), out_dtype),
        grid_spec=pltpu.PrefetchScalarGridSpec(
            num_scalar_prefetch=0,
            grid=(num_tiles,),
            in_specs=[
                pl.BlockSpec((tm, d_model_p), lambda i: (i, 0)),                   # x tile
                pl.BlockSpec((d_model_p, d_ff_p), lambda i: (0, 0), **_RESIDENT_KW),  # w1t
                pl.BlockSpec((1, d_ff_p), lambda i: (0, 0), **_RESIDENT_KW),          # b1
                pl.BlockSpec((d_ff_p, d_model_p), lambda i: (0, 0), **_RESIDENT_KW),  # w2t
                pl.BlockSpec((1, d_model_p), lambda i: (0, 0), **_RESIDENT_KW),       # b2
            ],
            out_specs=pl.BlockSpec((tm, d_model_p), lambda i: (i, 0)),
            scratch_shapes=[pltpu.VMEM((tm, d_model_p), jnp.float32)],
        ),
        compiler_params=pltpu.CompilerParams(
            dimension_semantics=("parallel",),   # shard tokens across v7x's 2 TCs
            vmem_limit_bytes=vmem_limit,
        ),
    )(x_p, w1t_p, b1_p, w2t_p, b2_p)

    out = out_p[:n, :d_model]
    return out.reshape(orig_shape)


def _init_linear(key, out_features, in_features, dtype=jnp.float32):
    """Deterministic nn.Linear-style init: U(-1/sqrt(fan_in), 1/sqrt(fan_in))."""
    kw, kb = jax.random.split(key)
    bound = 1.0 / math.sqrt(in_features)
    w = jax.random.uniform(kw, (out_features, in_features), dtype,
                           minval=-bound, maxval=bound)
    b = jax.random.uniform(kb, (out_features,), dtype,
                           minval=-bound, maxval=bound)
    return w, b


if __name__ == "__main__":
    # Module config: d_model=32, dim_feedforward=64, activation=ReLU, dropout=0.0
    d_model = 32
    dim_feedforward = 64
    batch, seq = 2, 8

    key = jax.random.PRNGKey(0)
    kx, k1, k2 = jax.random.split(key, 3)

    x = jax.random.normal(kx, (batch, seq, d_model), jnp.float32)
    w1, b1 = _init_linear(k1, dim_feedforward, d_model)   # linear1: (d_ff, d_model)
    w2, b2 = _init_linear(k2, d_model, dim_feedforward)   # linear2: (d_model, d_ff)

    # Pure-JAX reference (inference: dropout is identity).
    ref = jnp.maximum(x @ w1.T + b1, 0.0) @ w2.T + b2

    # Default path: bf16 MXU operands, f32 accumulation + f32 bias/ReLU epilogue.
    params_bf16 = prepare_ffn_params(w1, b1, w2, b2)           # once, off hot path
    out_bf16 = feed_forward_layer(x, *params_bf16)
    jax.block_until_ready(out_bf16)
    assert out_bf16.shape == ref.shape
    assert jnp.allclose(out_bf16, ref, atol=5e-2, rtol=5e-2), "bf16 mismatch vs reference"

    # Opt-in exact-accuracy path: f32 MXU operands.
    params_f32 = prepare_ffn_params(w1, b1, w2, b2, compute_dtype=jnp.float32)
    out_f32 = feed_forward_layer(x, *params_f32)
    jax.block_until_ready(out_f32)
    assert jnp.allclose(out_f32, ref, atol=1e-5, rtol=1e-5), "f32 mismatch vs reference"

    print("KERNEL_OK")
</pallas_src>

<mosaic_0001>
module attributes {stable_mosaic.version = 11 : i64} {
  func.func @_k(%arg0: i32, %arg1: memref<8x128xf32, #tpu.memory_space<vmem>>, %arg2: memref<8x128xf32, #tpu.memory_space<vmem>>) attributes {dimension_semantics = [#tpu.dimension_semantics<arbitrary>], iteration_bounds = array<i64: 2>, scalar_prefetch = 0 : i64, scratch_operands = 0 : i64, tpu.core_type = #tpu.core_type<tc>, window_params = [{pipeline_mode = #tpu.pipeline_mode<synchronous>, transform_indices = @transform_0, window_bounds = array<i64: 8, 128>}, {pipeline_mode = #tpu.pipeline_mode<synchronous>, transform_indices = @transform_1, window_bounds = array<i64: 8, 128>}]} {
    %c0 = arith.constant 0 : index
    %c0_0 = arith.constant 0 : index
    %0 = vector.load %arg1[%c0, %c0_0] : memref<8x128xf32, #tpu.memory_space<vmem>>, vector<8x128xf32>
    %c0_1 = arith.constant 0 : index
    %c0_2 = arith.constant 0 : index
    %1 = vector.load %arg2[%c0_1, %c0_2] : memref<8x128xf32, #tpu.memory_space<vmem>>, vector<8x128xf32>
    tpu.vector_store %arg2[%c0_1, %c0_2], %0 {strides = array<i32>} : memref<8x128xf32, #tpu.memory_space<vmem>>, vector<8x128xf32>,
    return
  }
  func.func @transform_0(%arg0: i32) -> (i32, i32) {
    %c0_i32 = arith.constant 0 : i32
    %c0_i32_0 = arith.constant 0 : i32
    %c0_i32_1 = arith.constant 0 : i32
    return %c0_i32, %c0_i32_0 : i32, i32
  }
  func.func @transform_1(%arg0: i32) -> (i32, i32) {
    %c0_i32 = arith.constant 0 : i32
    %c0_i32_0 = arith.constant 0 : i32
    %c0_i32_1 = arith.constant 0 : i32
    return %c0_i32, %c0_i32_0 : i32, i32
  }
}

module attributes {stable_mosaic.version = 11 : i64} {
  func.func @ffn_kernel(%arg0: i32, %arg1: memref<8x32xbf16, #tpu.memory_space<vmem>>, %arg2: memref<32x64xbf16, #tpu.memory_space<vmem>>, %arg3: memref<1x64xf32, #tpu.memory_space<vmem>>, %arg4: memref<64x32xbf16, #tpu.memory_space<vmem>>, %arg5: memref<1x32xf32, #tpu.memory_space<vmem>>, %arg6: memref<8x32xf32, #tpu.memory_space<vmem>>, %arg7: memref<8x32xf32, #tpu.memory_space<vmem>>) attributes {dimension_semantics = [#tpu.dimension_semantics<parallel>], iteration_bounds = array<i64: 2>, scalar_prefetch = 0 : i64, scratch_operands = 1 : i64, tpu.core_type = #tpu.core_type<tc>, window_params = [{transform_indices = @transform_0, window_bounds = array<i64: 8, 32>}, {pipeline_mode = #tpu.pipeline_mode<synchronous>, transform_indices = @transform_1, window_bounds = array<i64: 32, 64>}, {pipeline_mode = #tpu.pipeline_mode<synchronous>, transform_indices = @transform_2, window_bounds = array<i64: 1, 64>}, {pipeline_mode = #tpu.pipeline_mode<synchronous>, transform_indices = @transform_3, window_bounds = array<i64: 64, 32>}, {pipeline_mode = #tpu.pipeline_mode<synchronous>, transform_indices = @transform_4, window_bounds = array<i64: 1, 32>}, {transform_indices = @transform_5, window_bounds = array<i64: 8, 32>}]} {
    %c0 = arith.constant 0 : index
    %c0_0 = arith.constant 0 : index
    %0 = vector.load %arg1[%c0, %c0_0] : memref<8x32xbf16, #tpu.memory_space<vmem>>, vector<8x32xbf16>
    %cst = arith.constant 0.000000e+00 : f32
    %1 = vector.broadcast %cst : f32 to vector<8x32xf32>
    %c0_1 = arith.constant 0 : index
    %c0_2 = arith.constant 0 : index
    %2 = vector.load %arg7[%c0_1, %c0_2] : memref<8x32xf32, #tpu.memory_space<vmem>>, vector<8x32xf32>
    tpu.vector_store %arg7[%c0_1, %c0_2], %1 {strides = array<i32>} : memref<8x32xf32, #tpu.memory_space<vmem>>, vector<8x32xf32>,
    %c0_3 = arith.constant 0 : index
    %c0_4 = arith.constant 0 : index
    %3 = vector.load %arg2[%c0_3, %c0_4] : memref<32x64xbf16, #tpu.memory_space<vmem>>, vector<32x64xbf16>
    %c0_5 = arith.constant 0 : index
    %c0_6 = arith.constant 0 : index
    %4 = vector.load %arg3[%c0_5, %c0_6] : memref<1x64xf32, #tpu.memory_space<vmem>>, vector<1x64xf32>
    %cst_7 = arith.constant dense<0.000000e+00> : vector<8x64xf32>
    %5 = tpu.matmul %0, %3, %cst_7 {dimension_numbers = #tpu.dot_dimension_numbers<[1], [0], [0], [1], [0, 0, 1, 1], [], []>} : vector<8x32xbf16>, vector<32x64xbf16>, vector<8x64xf32> -> vector<8x64xf32>
    %6 = vector.broadcast %4 : vector<1x64xf32> to vector<8x64xf32>
    %7 = arith.addf %5, %6 : vector<8x64xf32>
    %cst_8 = arith.constant 0.000000e+00 : f32
    %8 = vector.broadcast %cst_8 : f32 to vector<8x64xf32>
    %9 = arith.maximumf %7, %8 : vector<8x64xf32>
    %c0_9 = arith.constant 0 : index
    %c0_10 = arith.constant 0 : index
    %10 = vector.load %arg4[%c0_9, %c0_10] : memref<64x32xbf16, #tpu.memory_space<vmem>>, vector<64x32xbf16>
    %c0_11 = arith.constant 0 : index
    %c0_12 = arith.constant 0 : index
    %11 = vector.load %arg7[%c0_11, %c0_12] : memref<8x32xf32, #tpu.memory_space<vmem>>, vector<8x32xf32>
    %12 = arith.truncf %9 : vector<8x64xf32> to vector<8x64xbf16>
    %cst_13 = arith.constant dense<0.000000e+00> : vector<8x32xf32>
    %13 = tpu.matmul %12, %10, %cst_13 {dimension_numbers = #tpu.dot_dimension_numbers<[1], [0], [0], [1], [0, 0, 1, 1], [], []>} : vector<8x64xbf16>, vector<64x32xbf16>, vector<8x32xf32> -> vector<8x32xf32>
    %14 = arith.addf %11, %13 : vector<8x32xf32>
    %c0_14 = arith.constant 0 : index
    %c0_15 = arith.constant 0 : index
    %15 = vector.load %arg7[%c0_14, %c0_15] : memref<8x32xf32, #tpu.memory_space<vmem>>, vector<8x32xf32>
    tpu.vector_store %arg7[%c0_14, %c0_15], %14 {strides = array<i32>} : memref<8x32xf32, #tpu.memory_space<vmem>>, vector<8x32xf32>,
    %c0_16 = arith.constant 0 : index
    %c0_17 = arith.constant 0 : index
    %16 = vector.load %arg7[%c0_16, %c0_17] : memref<8x32xf32, #tpu.memory_space<vmem>>, vector<8x32xf32>
    %c0_18 = arith.constant 0 : index
    %c0_19 = arith.constant 0 : index
    %17 = vector.load %arg5[%c0_18, %c0_19] : memref<1x32xf32, #tpu.memory_space<vmem>>, vector<1x32xf32>
    %18 = vector.broadcast %17 : vector<1x32xf32> to vector<8x32xf32>
    %19 = arith.addf %16, %18 : vector<8x32xf32>
    %c0_20 = arith.constant 0 : index
    %c0_21 = arith.constant 0 : index
    %20 = vector.load %arg6[%c0_20, %c0_21] : memref<8x32xf32, #tpu.memory_space<vmem>>, vector<8x32xf32>
    tpu.vector_store %arg6[%c0_20, %c0_21], %19 {strides = array<i32>} : memref<8x32xf32, #tpu.memory_space<vmem>>, vector<8x32xf32>,
    return
  }
  func.func @transform_0(%arg0: i32) -> (i32, i32) {
    %c0_i32 = arith.constant 0 : i32
    %c0_i32_0 = arith.constant 0 : i32
    return %arg0, %c0_i32 : i32, i32
  }
  func.func @transform_1(%arg0: i32) -> (i32, i32) {
    %c0_i32 = arith.constant 0 : i32
    %c0_i32_0 = arith.constant 0 : i32
    %c0_i32_1 = arith.constant 0 : i32
    return %c0_i32, %c0_i32_0 : i32, i32
  }
  func.func @transform_2(%arg0: i32) -> (i32, i32) {
    %c0_i32 = arith.constant 0 : i32
    %c0_i32_0 = arith.constant 0 : i32
    %c0_i32_1 = arith.constant 0 : i32
    return %c0_i32, %c0_i32_0 : i32, i32
  }
  func.func @transform_3(%arg0: i32) -> (i32, i32) {
    %c0_i32 = arith.constant 0 : i32
    %c0_i32_0 = arith.constant 0 : i32
    %c0_i32_1 = arith.constant 0 : i32
    return %c0_i32, %c0_i32_0 : i32, i32
  }
  func.func @transform_4(%arg0: i32) -> (i32, i32) {
    %c0_i32 = arith.constant 0 : i32
    %c0_i32_0 = arith.constant 0 : i32
    %c0_i32_1 = arith.constant 0 : i32
    return %c0_i32, %c0_i32_0 : i32, i32
  }
  func.func @transform_5(%arg0: i32) -> (i32, i32) {
    %c0_i32 = arith.constant 0 : i32
    %c0_i32_0 = arith.constant 0 : i32
    return %arg0, %c0_i32 : i32, i32
  }
}

</mosaic_0001>

<bundles_post_ra>
// kernel: tpu_custom_call.1
= control target key start
LH: loop header
LB: loop body
LE: loop exit
PB: predicated region body
PF: predicated region fallthrough
CT: control target
= control target key end

     0   :  { %6 = vsyncpa [#allocation3], 0  ;;  %s286_s0 = inlined_call_operand.hbm [shape: f32[8,128], index: 0, kind: input, shape index: {}]   ;;  %s287_s1 = inlined_call_operand.hbm [shape: f32[8,128], index: 1, kind: output, shape index: {}]  }
   0x1   :  { %7 = vsyncpa [#allocation4], 0  ;;  %s269_s6 = smov 0  }
   0x2 LB: > { %s148_s7 = sadd.s32 4294967295, %s255_s6   ;;  %p149_p0 = scmp.ge.s32.totalorder %s255_s6, 1  ;;  %s255_s6 = sphi %s269_s6, %s13_s6  }
   0x3   : > { %p60_p1 = scmp.lt.s32.totalorder %s255_s6, 3  ;;  %s72_s10 = sshll.u32 %s286_s0, 4  ;;  %s73_s10 = int_to_ptr.hbm [resolvable:$true] %s72_s10 }
   0x4   : > { %p169_p3 = scmp.eq.s32.totalorder %s148_s7, 0  ;;  %s257_s11 = smov [#allocation2]  }
   0x5   : > { %p61_p2 = pnand %p149_p0, %p60_p1  ;;  %s74_s12 = sshll.u32 %s257_s11, 4  ;;  %s75_s12 = int_to_ptr.vmem [resolvable:$true] %s74_s12 }
   0x7   : > { %p165_p4 = pneg %p61_p2  ;;  %87 = sbr.rel (%p61_p2) target bundleno = 19 (0x13), region = 24 }
   0x9   : > { %p166_p5 = pnand %p169_p3, %p165_p4 }
   0xb   : > { %168 = dma.hbm_to_vmem [thread:$0]  (!%p166_p5), %s73_s10, 128, %s75_s12, [#allocation3]  }
   0xc   : > { %246 = dma.done.wait (%p169_p3), [#allocation3], 128  }
   0xd   : > { %248 = vsyncadd (%p169_p3), [#allocation3], 4294967168  ;;  %s258_s13 = smov [#allocation5]   ;;  %s108_s17 = sshll.u32 %s287_s1, 4  ;;  %v98_v0 = vld [vmem:[#allocation2] sm:$0xff]  ;;  %s109_s17 = int_to_ptr.hbm [resolvable:$true] %s108_s17 }
   0xe   : > { %s106_s14 = sshll.u32 %s258_s13, 4  ;;  %p171_p6 = scmp.eq.s32.totalorder %s148_s7, 1  ;;  %99 = vst [vmem:[#allocation5] sm:$0xff] %v98_v0  ;;  %s107_s14 = int_to_ptr.vmem [resolvable:$true] %s106_s14 }
  0x10   : > { %162 = dma.vmem_to_hbm [thread:$0]  (%p171_p6), %s107_s14, 128, %s109_s17, [#allocation4]  }
  0x11   : > { %250 = dma.done.wait (%p171_p6), [#allocation4], 128  }
  0x12   : > { %252 = vsyncadd (%p171_p6), [#allocation4], 4294967168 }
  0x13 PF: > { %s13_s6 = sadd.s32 1, %s255_s6  }
  0x14   : > { %p10_p7 = scmp.ge.s32.totalorder %s13_s6, 4  }
  0x16   :  { %12 = sbr.rel (!%p10_p7) target bundleno = 2 (0x2), region = 53 }
  0x1b   :  { %122 = vsyncpa [#allocation3], 1 }
  0x1c   :  { %124 = vsyncpa [#allocation3 + $0x1], 1 }
  0x1d   :  { %125 = vsyncpa [#allocation4], 1 }
  0x1e   :  { %127 = vsyncpa [#allocation4 + $0x1], 1 }

// kernel: feed_forward_layer.1
= control target key start
LH: loop header
LB: loop body
LE: loop exit
PB: predicated region body
PF: predicated region fallthrough
CT: control target
= control target key end

     0   :  { %10 = vsyncpa [#allocation4], 0  ;;  %s688_s0 = inlined_call_operand.vmem [shape: bf16[16,32], index: 0, kind: input, shape index: {}]   ;;  %s689_s1 = inlined_call_operand.vmem [shape: bf16[32,64], index: 1, kind: input, shape index: {}]   ;;  %s690_s2 = inlined_call_operand.vmem [shape: f32[1,64], index: 2, kind: input, shape index: {}]   ;;  %s691_s3 = inlined_call_operand.vmem [shape: bf16[64,32], index: 3, kind: input, shape index: {}]   ;;  %s692_s4 = inlined_call_operand.vmem [shape: f32[1,32], index: 4, kind: input, shape index: {}]   ;;  %s693_s5 = inlined_call_operand.hbm [shape: f32[16,32], index: 5, kind: output, shape index: {}]  }
   0x1   :  { %12 = vsyncpa [#allocation4 + $0x1], 0  ;;  %s575_s18 = smov 0   ;;  %s577_s19 = smov 0  }
   0x2   :  { %s579_s20 = smov 0   ;;  %s581_s21 = smov 0  }
   0x3 LB: > { %s596_s22 = sadd.s32 4294967295, %s542_s21   ;;  %s396_s23 = sadd.s32 4294967294, %s542_s21   ;;  %s542_s21 = sphi %s581_s21, %s699_s21   ;;  %s538_s20 = sphi %s579_s20, %s698_s20   ;;  %s534_s19 = sphi %s577_s19, %s697_s19   ;;  %s530_s18 = sphi %s575_s18, %s696_s18  }
   0x4   : > { %s600_s24 = sadd.s32 1, %s542_s21   ;;  %s135_s25 = sadd.s32 1, %s538_s20 }
   0x5   : > { %s132_s26 = ssub.s32 %s542_s21, %s600_s24  ;;  %p145_p0 = scmp.ne.s32.totalorder %s538_s20, %s534_s19 }
   0x6   : > { %p133_p1 = scmp.eq.s32.totalorder %s132_s26, 0  ;;  %p146_p2 = scmp.eq.s32.totalorder %s596_s22, 1 }
   0x7   : > { %p151_p3 = scmp.ne.s32.totalorder %s534_s19, %s530_s18  ;;  %p152_p4 = scmp.eq.s32.totalorder %s396_s23, 1 }
   0x8   : > { %s611_s27 = scalar_select %p133_p1, %s538_s20, %s135_s25  }
   0x9   : > { %p613_p5 = por %p146_p2, %p145_p0  ;;  %p617_p6 = por %p152_p4, %p151_p3 }
   0xa   : > { %p399_p7 = scmp.ge.s32.totalorder %s542_s21, 1  ;;  %p189_p8 = scmp.lt.s32.totalorder %s542_s21, 3 }
   0xc   : > { %p190_p9 = pnand %p399_p7, %p189_p8 }
   0xd   : > { %p216_p10 = scmp.lt.s32.totalorder (!%p190_p9), %s596_s22, 1  ;;  %s213_s8 = sand.u32 (!%p190_p9), 1, %s534_s19  }
   0xe   : > { %193 = sbr.rel (%p190_p9) target bundleno = 300 (0x12c), region = 40  ;;  %s400_s9 = sshll.u32 (!%p190_p9), %s213_s8, 3 }
   0xf   : > { %s429_s10 = sshll.u32 (!%p190_p9), %s596_s22, 3  ;;  %s215_s16 = scalar_lea.vmem (!%p190_p9), [#allocation3], %s400_s9 }
  0x10   : > { %s332_s13 = scalar_lea.hbm (!%p190_p9), %s693_s5, %s429_s10  ;;  %s500_s7 = scalar_lea.hbm (!%p190_p9), %s693_s5, 16 }
  0x11   : > { %s336_s23 = sshll.u32 (!%p190_p9), %s332_s13, 4  ;;  %s337_s23 = int_to_ptr.hbm [resolvable:$true] %s336_s23 }
  0x12   : > { %s494_s25 = sshra.s32 (!%p190_p9), %s337_s23, 4  ;;  %s495_s25 = int_to_ptr.hbm [resolvable:$true] %s494_s25 }
  0x13   : > { %v433_v0 = vld [vmem:[%s689_s1 + $0x8] sm:$0xff]  ;;  %vm222_vm0 = vcmask 261120   ;;  %v437_v1 = vld [vmem:[%s691_s3 + $0x18] sm:$0xff]  ;;  %v544_v2 = vmov 0.0   ;;  %v432_v3 = vld [vmem:[%s689_s1] sm:$0xff]  ;;  %s217_s11 = scalar_select %p216_p10, %s596_s22, 1 }
  0x14   : > { %223 = vst.msk [vmem:[#allocation2] sm:$0xff] %vm222_vm0, %v544_v2  ;;  %253 = vmatpush.bf16.msra.mxu0 %v433_v0  ;;  %303 = vmatpush.bf16.msra.mxu1 %v437_v1  ;;  %v436_v4 = vld [vmem:[%s691_s3 + $0x10] sm:$0xff]  ;;  %v435_v6 = vld [vmem:[%s691_s3 + $0x8] sm:$0xff]  ;;  %v434_v7 = vld [vmem:[%s691_s3] sm:$0xff]  ;;  %vm295_vm1 = vcmask 523264   ;;  %s322_s22 = scalar_lea.sflag [#allocation4], %s213_s8  ;;  %p501_p0 = scmp.lt.s32.totalorder %s495_s25, %s693_s5 }
  0x15   : > { %s401_s14 = sshll.u32 %s217_s11, 2  ;;  %v478_v8 = vld [vmem:[%s690_s2] ss:$0 sm:$0xff]  ;;  %s496_s26 = scalar_lea.hbm %s495_s25, 8 }
  0x16   : > { %s219_s17 = scalar_lea.vmem %s688_s0, %s401_s14  ;;  %v479_v17 = vld [vmem:[%s692_s4] ss:$0 sm:$0xff]  ;;  %p497_p11 = scmp.ne.s32.totalorder %s495_s25, %s496_s26 }
  0x17   : > { %v221_v5 = vld [vmem:[%s219_s17] sm:$0xf]  ;;  %s334_s17 = sshll.u32 %s215_s16, 4  ;;  %p502_p1 = scmp.lt.s32.totalorder %s500_s7, %s496_s26  ;;  %s335_s17 = int_to_ptr.vmem [resolvable:$true] %s334_s17 }
  0x18   : > { %254 = vmatpush.bf16.msra.mxu0 %v432_v3  ;;  %304 = vmatpush.bf16.msra.mxu1 %v436_v4  ;;  %p498_p12 = pnand %p497_p11, %p613_p5 }
  0x19   : > { %p503_p2 = por %p502_p1, %p501_p0 }
  0x1a   : > { %p499_p13 = pneg %p498_p12 }
  0x1b   : > { %410 = vmatmul.msk.bf16.vlgmr.msra.gmra.mxu0 %vm222_vm0, %v221_v5  ;;  %v269_v14 = vld [vmem:[#allocation2] sm:$0xff] }
  0x1c   : > { %305 = vmatpush.bf16.msra.mxu1 %v435_v6  ;;  %p504_p3 = pnand %p503_p2, %p499_p13 }
  0x20   : > { %306 = vmatpush.bf16.msra.mxu1 %v434_v7 }
  0x98   : > { %v256_v9 = vpop.f32.mrf.mxu0 }
  0x99   : > { %v257_v10 = vadd.f32 %v478_v8, %v256_v9 }
  0x9b   : > { %v260_v11 = vmax.f32 %v257_v10, 0.0 }
  0x9d   : > { %v270_v12 = vpack.c.bf16 %v260_v11, %v260_v11 }
  0x9f   : > { %427 = vmatmul.msk.bf16.vlgmr.msra.gmra.mxu1 %vm295_vm1, %v270_v12 }
  0xa0   : > { %v258_v13 = vpop.f32.mrf.mxu0 }
 0x11c   : > { %v308_v15 = vpop.f32.mrf.mxu1 }
 0x11d   : > { %v312_v16 = vadd.f32 %v308_v15, %v269_v14 }
 0x11f   : > { %313 = vst.msk [vmem:[#allocation2] sm:$0xff] %vm222_vm0, %v312_v16 }
 0x124   : > { %v310_v18 = vpop.f32.mrf.mxu1 }
 0x126   : > { %v314_v19 = vld [vmem:[#allocation2] sm:$0xff] }
 0x127   : > { %v319_v20 = vadd.f32 %v479_v17, %v314_v19 }
 0x129   : > { %320 = vst.msk [vmem:[%s215_s16] sm:$0xff] %vm222_vm0, %v319_v20 }
 0x12a   : > { %507 = shalt.err (!%p504_p3)
}
 0x12b   : > { %438 = dma.vmem_to_hbm [thread:$0]  (%p613_p5), %s335_s17, 128, %s337_s23, %s322_s22  }
 0x12c PF: > { %p444_p4 = scmp.ge.s32.totalorder %s542_s21, 2  ;;  %s348_s8 = sand.u32 1, %s530_s18  }
 0x12d   : > { %s349_s11 = scalar_lea.sflag [#allocation4], %s348_s8 }
 0x12e   : > { %p441_p7 = pnand %p444_p4, %p617_p6 }
 0x130   : > { %p442_p8 = pneg %p441_p7 }
 0x132   : > { %525 = dma.done.wait (%p442_p8), %s349_s11, 128  }
 0x133   : > { %527 = vsyncadd (%p442_p8), %s349_s11, 4294967168  ;;  %p15_p9 = scmp.ge.s32.totalorder %s600_s24, 4   ;;  %s696_s18 = smov %s534_s19 }
 0x134   : > { %s697_s19 = smov %s538_s20  ;;  %s698_s20 = smov %s611_s27 }
 0x135   : > { %s699_s21 = smov %s600_s24  ;;  %17 = sbr.rel (!%p15_p9) target bundleno = 3 (0x3), region = 75 }
 0x13a   :  { %355 = vsyncpa [#allocation4], 1 }
 0x13b   :  { %357 = vsyncpa [#allocation4 + $0x1], 1 }

</bundles_post_ra>
